<compile_context>
chip_gen: v5e
topology: v5e:2x2
jax: 0.10.0
libtpu: 0.0.40
codegen_flags: <defaults>
</compile_context>

<pallas_src>
import jax
import jax.numpy as jnp
import numpy as np
from jax.experimental import pallas as pl
from jax.experimental.pallas import tpu as pltpu


# --------------------------------------------------------------------------- #
# Kernels
# --------------------------------------------------------------------------- #
def _additive_attention_kernel(x_ref, w_ref, b_ref, we_ref, out_ref, attn_ref):
    """Resident path: the full sequence for TB batch rows lives in VMEM."""
    tb, s, h = x_ref.shape
    x = x_ref[...]                                               # (TB, S, H)

    # Fused projection tanh(x @ (Wq+Wk)^T + (bq+bk)): bf16 MXU, f32 accumulate.
    t = jnp.tanh(
        jnp.dot(x.reshape(tb * s, h).astype(w_ref.dtype), w_ref[...],
                preferred_element_type=jnp.float32) + b_ref[...])

    # Energy projection H->1 on the VPU/XLU (no 1-column MXU matmul), kept
    # sublane-major (TB, S, 1) so softmax + reweight never relayout `a`.
    e = jnp.sum(t.reshape(tb, s, h) * we_ref[...], axis=-1, keepdims=True)

    # Numerically-stable softmax over the sequence axis (PyTorch dim=1).
    m = jnp.max(e, axis=1, keepdims=True)                        # (TB, 1, 1)
    p = jnp.exp(e - m)
    a = p * pl.reciprocal(jnp.sum(p, axis=1, keepdims=True), approx=True)

    attn_ref[...] = a.astype(attn_ref.dtype)                     # (TB, S, 1)
    out_ref[...] = (a * x.astype(jnp.float32)).astype(out_ref.dtype)


def _additive_attention_stiled_kernel(x_ref, w_ref, b_ref, we_ref,
                                      out_ref, attn_ref, m_ref, l_ref):
    """S-tiled two-pass path.  grid = (B/TB, 2, S/TS).
    Pass 0 (p==0): online max/sum accumulation into VMEM scratch.
    Pass 1 (p==1): recompute energies, normalize, emit out / attn tiles."""
    p_idx = pl.program_id(1)
    s_idx = pl.program_id(2)
    tb, ts, h = x_ref.shape

    x = x_ref[...]                                               # (TB, TS, H)
    t = jnp.tanh(
        jnp.dot(x.reshape(tb * ts, h).astype(w_ref.dtype), w_ref[...],
                preferred_element_type=jnp.float32) + b_ref[...])
    e = jnp.sum(t.reshape(tb, ts, h) * we_ref[...], axis=-1, keepdims=True)

    @pl.when(jnp.logical_and(p_idx == 0, s_idx == 0))
    def _():
        m_ref[...] = jnp.full_like(m_ref, -jnp.inf)
        l_ref[...] = jnp.zeros_like(l_ref)

    @pl.when(p_idx == 0)
    def _():
        m_prev = m_ref[...]
        m_new = jnp.maximum(m_prev, jnp.max(e, axis=1, keepdims=True))
        l_ref[...] = (l_ref[...] * jnp.exp(m_prev - m_new)
                      + jnp.sum(jnp.exp(e - m_new), axis=1, keepdims=True))
        m_ref[...] = m_new

    @pl.when(p_idx == 1)
    def _():
        a = jnp.exp(e - m_ref[...]) * pl.reciprocal(l_ref[...], approx=True)
        attn_ref[...] = a.astype(attn_ref.dtype)
        out_ref[...] = (a * x.astype(jnp.float32)).astype(out_ref.dtype)


# --------------------------------------------------------------------------- #
# Tiling / budgeting helpers
# --------------------------------------------------------------------------- #
def _round_up(x, m):
    return ((x + m - 1) // m) * m


def _vmem_capacity_bytes():
    """Per-TensorCore VMEM; conservative 64 MiB (v7x) if the query is unavailable."""
    try:
        return int(pltpu.get_tpu_info().vmem_capacity_bytes)
    except Exception:
        return 64 << 20


def _vmem_footprint(tb, ts, h, x_isize, out_isize, w_isize, weight_bufs):
    """Rough per-step VMEM footprint in bytes (with lane/sublane padding)."""
    hp = _round_up(h, 128)
    tsp = _round_up(ts, 8)
    x_tile = tb * tsp * hp * x_isize
    out_tile = tb * tsp * hp * out_isize
    attn_tile = tb * tsp * 128 * 4                 # (TB, TS, 1): lane dim padded to 128
    params = hp * hp * w_isize + 2 * 8 * hp * 4    # W_comb + (b_comb, we) rows
    temps = 3 * tb * tsp * hp * 4 + 4 * tb * tsp * 128 * 4
    return 2 * (x_tile + out_tile + attn_tile) + weight_bufs * params + temps + (2 << 20)


def _pick_batch_tile(batch, fits):
    """Largest divisor of `batch` that fits the budget, preferring >=4 grid steps
    (>=2 per TensorCore on v7x megacore), then >=2, then any.  None if nothing fits."""
    good = [d for d in range(1, batch + 1) if batch % d == 0 and fits(d)]
    if not good:
        return None
    for min_steps in (4, 2, 1):
        cand = [d for d in good if batch // d >= min_steps]
        if cand:
            return max(cand)
    return good[-1]


def _pick_s_tile(seq, fits):
    """Largest multiple-of-8 divisor of `seq` whose footprint fits; None otherwise."""
    cand = [t for t in range(8, seq + 1, 8) if seq % t == 0 and fits(t)]
    return max(cand) if cand else None


def _param_spec(shape, index_map, single_buffer):
    """BlockSpec for a grid-constant parameter.  For large weights, request 1-deep
    buffering so the unused second weight buffer does not steal activation VMEM."""
    if single_buffer and hasattr(pl, "Buffered"):
        try:
            return pl.BlockSpec(shape, index_map, pipeline_mode=pl.Buffered(1))
        except Exception:  # older jax without pipeline_mode -- fall back
            pass
    return pl.BlockSpec(shape, index_map)


# --------------------------------------------------------------------------- #
# Wrapper
# --------------------------------------------------------------------------- #
def additive_attention(hidden_states, wq, bq, wk, bk, we, be, *,
                       matmul_dtype=jnp.bfloat16, s_tile=None):
    """AdditiveAttention forward.

    hidden_states: (B, S, H), f32 or bf16.  wq, wk: (H, H) (PyTorch (out, in));
    bq, bk: (H,); we: (1, H); be: (1,).
    Returns (weighted_representations (B, S, H) in hidden_states.dtype,
             attention_weights (B, S, 1) f32).

    `be` is accepted for API parity but unused: softmax is shift-invariant, so
    the scalar energy bias is an exact no-op on both outputs.
    """
    del be
    B, S, H = hidden_states.shape
    x = hidden_states
    x_isize = jnp.dtype(x.dtype).itemsize
    w_isize = jnp.dtype(matmul_dtype).itemsize

    # Exact fusion: q and k only ever appear as q + k.
    w_comb = (wq + wk).T.astype(matmul_dtype)                    # (H, H)
    b_comb = (bq + bk).reshape(1, H).astype(jnp.float32)         # (1, H)
    we_row = we.reshape(1, H).astype(jnp.float32)                # (1, H)

    # Generation-aware VMEM budget.
    cap = _vmem_capacity_bytes()
    usable = int(cap * 0.8)

    hp = _round_up(H, 128)
    single_buf_w = hp * hp * w_isize >= (1 << 20)
    weight_bufs = 1 if single_buf_w else 2

    def fp(tb_, ts_):
        return _vmem_footprint(tb_, ts_, H, x_isize, x_isize, w_isize, weight_bufs)

    tb, ts = None, None
    if s_tile is not None:
        if S % s_tile != 0 or s_tile % 8 != 0:
            raise ValueError("s_tile must divide S and be a multiple of 8")
        ts = int(s_tile)
    else:
        tb = _pick_batch_tile(B, lambda d: fp(d, S) <= usable)
        if tb is None:
            ts = _pick_s_tile(S, lambda t: fp(1, t) <= usable)
            if ts is None:
                # TODO(synk): no multiple-of-8 divisor of S fits -- fall back to a
                # monolithic TB=1 slab with a near-capacity VMEM limit.
                tb = 1

    out_shapes = (jax.ShapeDtypeStruct((B, S, H), x.dtype),
                  jax.ShapeDtypeStruct((B, S, 1), jnp.float32))

    if ts is None:
        # ---------------- resident (single-pass) path ----------------
        vmem_limit = int(min(cap * 0.9, max(fp(tb, S), 16 << 20)))
        const2 = lambda b: (0, 0)
        return pl.pallas_call(
            _additive_attention_kernel,
            out_shape=out_shapes,
            grid_spec=pltpu.PrefetchScalarGridSpec(
                num_scalar_prefetch=0,
                grid=(B // tb,),
                in_specs=[
                    pl.BlockSpec((tb, S, H), lambda b: (b, 0, 0)),   # hidden_states
                    _param_spec((H, H), const2, single_buf_w),       # (Wq+Wk)^T
                    _param_spec((1, H), const2, single_buf_w),       # bq+bk
                    _param_spec((1, H), const2, single_buf_w),       # We row
                ],
                out_specs=[
                    pl.BlockSpec((tb, S, H), lambda b: (b, 0, 0)),   # weighted reps
                    pl.BlockSpec((tb, S, 1), lambda b: (b, 0, 0)),   # attention weights
                ],
            ),
            compiler_params=pltpu.CompilerParams(
                dimension_semantics=("parallel",),
                vmem_limit_bytes=vmem_limit),
        )(x, w_comb, b_comb, we_row)

    # ---------------- S-tiled two-pass online-softmax path ----------------
    tb = _pick_batch_tile(B, lambda d: fp(d, ts) <= usable) or 1
    vmem_limit = int(min(cap * 0.9, max(fp(tb, ts), 16 << 20)))
    const3 = lambda b, p, s: (0, 0)
    return pl.pallas_call(
        _additive_attention_stiled_kernel,
        out_shape=out_shapes,
        grid_spec=pltpu.PrefetchScalarGridSpec(
            num_scalar_prefetch=0,
            grid=(B // tb, 2, S // ts),
            in_specs=[
                pl.BlockSpec((tb, ts, H), lambda b, p, s: (b, s, 0)),
                _param_spec((H, H), const3, single_buf_w),
                _param_spec((1, H), const3, single_buf_w),
                _param_spec((1, H), const3, single_buf_w),
            ],
            out_specs=[
                # Output block index is pinned to (b, 0) during pass 0 (no stale
                # writebacks) and advances monotonically during pass 1.
                pl.BlockSpec((tb, ts, H), lambda b, p, s: (b, s * p, 0)),
                pl.BlockSpec((tb, ts, 1), lambda b, p, s: (b, s * p, 0)),
            ],
            scratch_shapes=[pltpu.VMEM((tb, 1, 1), jnp.float32),   # running max
                            pltpu.VMEM((tb, 1, 1), jnp.float32)],  # running sum
        ),
        compiler_params=pltpu.CompilerParams(
            dimension_semantics=("parallel", "arbitrary", "arbitrary"),
            vmem_limit_bytes=vmem_limit),
    )(x, w_comb, b_comb, we_row)


# --------------------------------------------------------------------------- #
# Reference + test
# --------------------------------------------------------------------------- #
def _reference(hidden_states, wq, bq, wk, bk, we, be):
    q = hidden_states @ wq.T + bq
    k = hidden_states @ wk.T + bk
    e = jnp.tanh(q + k) @ we.T + be                    # (B, S, 1)
    a = jax.nn.softmax(e, axis=1)
    return a * hidden_states, a


if __name__ == "__main__":
    B, S, H = 2, 8, 32
    key = jax.random.PRNGKey(0)
    kx, kwq, kbq, kwk, kbk, kwe, kbe, kx2 = jax.random.split(key, 8)

    # Deterministic parameters (shapes follow nn.Linear(H, H) / nn.Linear(H, 1)).
    scale = 1.0 / np.sqrt(H)
    wq = jax.random.uniform(kwq, (H, H), jnp.float32, -scale, scale)
    bq = jax.random.uniform(kbq, (H,), jnp.float32, -scale, scale)
    wk = jax.random.uniform(kwk, (H, H), jnp.float32, -scale, scale)
    bk = jax.random.uniform(kbk, (H,), jnp.float32, -scale, scale)
    we = jax.random.uniform(kwe, (1, H), jnp.float32, -scale, scale)
    be = jax.random.uniform(kbe, (1,), jnp.float32, -scale, scale)

    # 1) Small shape -> resident single-pass path.
    x1 = jax.random.normal(kx, (B, S, H), dtype=jnp.float32)
    out1, attn1 = additive_attention(x1, wq, bq, wk, bk, we, be)
    jax.block_until_ready((out1, attn1))
    ref_out1, ref_attn1 = _reference(x1, wq, bq, wk, bk, we, be)
    np.testing.assert_allclose(np.asarray(attn1), np.asarray(ref_attn1),
                               rtol=1e-2, atol=2e-3)
    np.testing.assert_allclose(np.asarray(out1), np.asarray(ref_out1),
                               rtol=1e-2, atol=2e-3)

    # 2) Force the S-tiled two-pass online-softmax path (long-sequence / v7x path).
    S2 = 64
    x2 = jax.random.normal(kx2, (B, S2, H), dtype=jnp.float32)
    out2, attn2 = additive_attention(x2, wq, bq, wk, bk, we, be, s_tile=16)
    jax.block_until_ready((out2, attn2))
    ref_out2, ref_attn2 = _reference(x2, wq, bq, wk, bk, we, be)
    np.testing.assert_allclose(np.asarray(attn2), np.asarray(ref_attn2),
                               rtol=1e-2, atol=2e-3)
    np.testing.assert_allclose(np.asarray(out2), np.asarray(ref_out2),
                               rtol=1e-2, atol=2e-3)

    print("KERNEL_OK")
</pallas_src>

<mosaic_0001>
module attributes {stable_mosaic.version = 11 : i64} {
  func.func @_additive_attention_kernel(%arg0: i32, %arg1: memref<1x8x32xf32, #tpu.memory_space<vmem>>, %arg2: memref<32x32xbf16, #tpu.memory_space<vmem>>, %arg3: memref<1x32xf32, #tpu.memory_space<vmem>>, %arg4: memref<1x32xf32, #tpu.memory_space<vmem>>, %arg5: memref<1x8x32xf32, #tpu.memory_space<vmem>>, %arg6: memref<1x8x1xf32, #tpu.memory_space<vmem>>) attributes {dimension_semantics = [#tpu.dimension_semantics<parallel>], iteration_bounds = array<i64: 2>, scalar_prefetch = 0 : i64, scratch_operands = 0 : i64, tpu.core_type = #tpu.core_type<tc>, window_params = [{transform_indices = @transform_0, window_bounds = array<i64: 1, 8, 32>}, {pipeline_mode = #tpu.pipeline_mode<synchronous>, transform_indices = @transform_1, window_bounds = array<i64: 32, 32>}, {pipeline_mode = #tpu.pipeline_mode<synchronous>, transform_indices = @transform_2, window_bounds = array<i64: 1, 32>}, {pipeline_mode = #tpu.pipeline_mode<synchronous>, transform_indices = @transform_3, window_bounds = array<i64: 1, 32>}, {transform_indices = @transform_4, window_bounds = array<i64: 1, 8, 32>}, {transform_indices = @transform_5, window_bounds = array<i64: 1, 8, 1>}]} {
    %c0 = arith.constant 0 : index
    %c0_0 = arith.constant 0 : index
    %c0_1 = arith.constant 0 : index
    %0 = vector.load %arg1[%c0, %c0_0, %c0_1] : memref<1x8x32xf32, #tpu.memory_space<vmem>>, vector<1x8x32xf32>
    %1 = vector.shape_cast %0 : vector<1x8x32xf32> to vector<8x32xf32>
    %2 = arith.truncf %1 : vector<8x32xf32> to vector<8x32xbf16>
    %c0_2 = arith.constant 0 : index
    %c0_3 = arith.constant 0 : index
    %3 = vector.load %arg2[%c0_2, %c0_3] : memref<32x32xbf16, #tpu.memory_space<vmem>>, vector<32x32xbf16>
    %cst = arith.constant dense<0.000000e+00> : vector<8x32xf32>
    %4 = tpu.matmul %2, %3, %cst {dimension_numbers = #tpu.dot_dimension_numbers<[1], [0], [0], [1], [0, 0, 1, 1], [], []>} : vector<8x32xbf16>, vector<32x32xbf16>, vector<8x32xf32> -> vector<8x32xf32>
    %c0_4 = arith.constant 0 : index
    %c0_5 = arith.constant 0 : index
    %5 = vector.load %arg3[%c0_4, %c0_5] : memref<1x32xf32, #tpu.memory_space<vmem>>, vector<1x32xf32>
    %6 = vector.broadcast %5 : vector<1x32xf32> to vector<8x32xf32>
    %7 = arith.addf %4, %6 : vector<8x32xf32>
    %8 = math.tanh %7 : vector<8x32xf32>
    %9 = vector.shape_cast %8 : vector<8x32xf32> to vector<1x8x32xf32>
    %c0_6 = arith.constant 0 : index
    %c0_7 = arith.constant 0 : index
    %10 = vector.load %arg4[%c0_6, %c0_7] : memref<1x32xf32, #tpu.memory_space<vmem>>, vector<1x32xf32>
    %11 = vector.shape_cast %10 : vector<1x32xf32> to vector<1x1x32xf32>
    %12 = vector.broadcast %11 : vector<1x1x32xf32> to vector<1x8x32xf32>
    %13 = arith.mulf %9, %12 : vector<1x8x32xf32>
    %cst_8 = arith.constant dense<0.000000e+00> : vector<1x8xf32>
    %14 = vector.multi_reduction <add>, %13, %cst_8 [2] : vector<1x8x32xf32> to vector<1x8xf32>
    %15 = vector.shape_cast %14 : vector<1x8xf32> to vector<1x8x1xf32>
    %cst_9 = arith.constant dense<0xFF800000> : vector<1x1xf32>
    %16 = vector.multi_reduction <maximumf>, %15, %cst_9 [1] : vector<1x8x1xf32> to vector<1x1xf32>
    %17 = vector.shape_cast %16 : vector<1x1xf32> to vector<1x1x1xf32>
    %18 = vector.broadcast %17 : vector<1x1x1xf32> to vector<1x8x1xf32>
    %19 = arith.subf %15, %18 : vector<1x8x1xf32>
    %20 = math.exp %19 : vector<1x8x1xf32>
    %cst_10 = arith.constant dense<0.000000e+00> : vector<1x1xf32>
    %21 = vector.multi_reduction <add>, %20, %cst_10 [1] : vector<1x8x1xf32> to vector<1x1xf32>
    %22 = vector.shape_cast %21 : vector<1x1xf32> to vector<1x1x1xf32>
    %23 = tpu.reciprocal %22 {approx = true} : vector<1x1x1xf32> -> vector<1x1x1xf32>
    %24 = vector.broadcast %23 : vector<1x1x1xf32> to vector<1x8x1xf32>
    %25 = arith.mulf %20, %24 : vector<1x8x1xf32>
    %c0_11 = arith.constant 0 : index
    %c0_12 = arith.constant 0 : index
    %c0_13 = arith.constant 0 : index
    %26 = vector.load %arg6[%c0_11, %c0_12, %c0_13] : memref<1x8x1xf32, #tpu.memory_space<vmem>>, vector<1x8x1xf32>
    tpu.vector_store %arg6[%c0_11, %c0_12, %c0_13], %25 {strides = array<i32>} : memref<1x8x1xf32, #tpu.memory_space<vmem>>, vector<1x8x1xf32>,
    %27 = vector.broadcast %25 : vector<1x8x1xf32> to vector<1x8x32xf32>
    %28 = arith.mulf %27, %0 : vector<1x8x32xf32>
    %c0_14 = arith.constant 0 : index
    %c0_15 = arith.constant 0 : index
    %c0_16 = arith.constant 0 : index
    %29 = vector.load %arg5[%c0_14, %c0_15, %c0_16] : memref<1x8x32xf32, #tpu.memory_space<vmem>>, vector<1x8x32xf32>
    tpu.vector_store %arg5[%c0_14, %c0_15, %c0_16], %28 {strides = array<i32>} : memref<1x8x32xf32, #tpu.memory_space<vmem>>, vector<1x8x32xf32>,
    return
  }
  func.func @transform_0(%arg0: i32) -> (i32, i32, i32) {
    %c0_i32 = arith.constant 0 : i32
    %c0_i32_0 = arith.constant 0 : i32
    %c0_i32_1 = arith.constant 0 : i32
    return %arg0, %c0_i32, %c0_i32_0 : i32, i32, i32
  }
  func.func @transform_1(%arg0: i32) -> (i32, i32) {
    %c0_i32 = arith.constant 0 : i32
    %c0_i32_0 = arith.constant 0 : i32
    %c0_i32_1 = arith.constant 0 : i32
    return %c0_i32, %c0_i32_0 : i32, i32
  }
  func.func @transform_2(%arg0: i32) -> (i32, i32) {
    %c0_i32 = arith.constant 0 : i32
    %c0_i32_0 = arith.constant 0 : i32
    %c0_i32_1 = arith.constant 0 : i32
    return %c0_i32, %c0_i32_0 : i32, i32
  }
  func.func @transform_3(%arg0: i32) -> (i32, i32) {
    %c0_i32 = arith.constant 0 : i32
    %c0_i32_0 = arith.constant 0 : i32
    %c0_i32_1 = arith.constant 0 : i32
    return %c0_i32, %c0_i32_0 : i32, i32
  }
  func.func @transform_4(%arg0: i32) -> (i32, i32, i32) {
    %c0_i32 = arith.constant 0 : i32
    %c0_i32_0 = arith.constant 0 : i32
    %c0_i32_1 = arith.constant 0 : i32
    return %arg0, %c0_i32, %c0_i32_0 : i32, i32, i32
  }
  func.func @transform_5(%arg0: i32) -> (i32, i32, i32) {
    %c0_i32 = arith.constant 0 : i32
    %c0_i32_0 = arith.constant 0 : i32
    %c0_i32_1 = arith.constant 0 : i32
    return %arg0, %c0_i32, %c0_i32_0 : i32, i32, i32
  }
}

</mosaic_0001>

<bundles_post_ra>
// kernel: tpu_custom_call.1
= control target key start
LH: loop header
LB: loop body
LE: loop exit
PB: predicated region body
PF: predicated region fallthrough
CT: control target
= control target key end

     0   :  { %11 = vsyncpa [#allocation3], 0  ;;  %s879_s0 = inlined_call_operand.hbm [shape: f32[2,8,32], index: 0, kind: input, shape index: {}]   ;;  %s880_s1 = inlined_call_operand.hbm [shape: bf16[32,32], index: 1, kind: input, shape index: {}]   ;;  %s881_s2 = inlined_call_operand.vmem [shape: f32[1,32], index: 2, kind: input, shape index: {}]   ;;  %s882_s3 = inlined_call_operand.vmem [shape: f32[1,32], index: 3, kind: input, shape index: {}]   ;;  %s883_s4 = inlined_call_operand.hbm [shape: f32[2,8,32], index: 4, kind: output, shape index: {0}]   ;;  %s884_s5 = inlined_call_operand.vmem [shape: f32[2,8,1], index: 5, kind: output, shape index: {1}]  }
   0x1   :  { %13 = vsyncpa [#allocation3 + $0x1], 0 }
   0x2   :  { %14 = vsyncpa [#allocation6], 0 }
   0x3   :  { %15 = vsyncpa [#allocation4], 0 }
   0x4   :  { %17 = vsyncpa [#allocation4 + $0x1], 0  ;;  %s725_s18 = smov 0   ;;  %s727_s19 = smov 0  }
   0x5   :  { %s729_s20 = smov 0   ;;  %s731_s21 = smov 0  }
   0x6 LB: > { %s180_s24 = sshll.u32 %s880_s1, 4  ;;  %s749_s25 = sadd.s32 4294967295, %s690_s21   ;;  %s690_s21 = sphi %s731_s21, %s894_s21   ;;  %s686_s20 = sphi %s729_s20, %s893_s20   ;;  %s682_s19 = sphi %s727_s19, %s892_s19   ;;  %s678_s18 = sphi %s725_s18, %s891_s18   ;;  %s181_s24 = int_to_ptr.hbm [resolvable:$true] %s180_s24 }
   0x7   : > { %p468_p0 = scmp.ge.s32.totalorder %s690_s21, 1  ;;  %p44_p1 = scmp.eq.s32.totalorder %s749_s25, 0 }
   0x8   : > { %p169_p2 = scmp.lt.s32.totalorder %s690_s21, 3  ;;  %s692_s27 = smov [#allocation5]  }
   0x9   : > { %s182_s28 = sshll.u32 %s692_s27, 4  ;;  %s693_s29 = smov 64   ;;  %s183_s28 = int_to_ptr.vmem [resolvable:$true] %s182_s28 }
   0xa   : > { %p754_p3 = pnand %p468_p0, %p169_p2  ;;  %s694_s30 = smov 4  }
   0xb   : > { %s467_s6 = sadd.s32 4294967294, %s690_s21   ;;  %s765_s7 = sadd.s32 1, %s690_s21  }
   0xc   : > { %p501_p4 = pneg %p754_p3  ;;  %s30_s8 = sadd.s32 1, %s686_s20 }
   0xd   : > { %s27_s9 = ssub.s32 %s690_s21, %s765_s7  ;;  %p37_p7 = scmp.ne.s32.totalorder %s686_s20, %s682_s19 }
   0xe   : > { %p502_p6 = pnand %p501_p4, %p44_p1  ;;  %p28_p8 = scmp.eq.s32.totalorder %s27_s9, 0 }
   0xf   : > { %p38_p9 = scmp.eq.s32.totalorder %s690_s21, 0  ;;  %p43_p10 = scmp.ne.s32.totalorder %s682_s19, %s678_s18 }
  0x10   : > { %504 = dma.hbm_to_vmem [thread:$0]  (!%p502_p6), %s181_s24, 256, %s183_s28, [#allocation6], %s693_s29, %s693_s29, %s694_s30  }
  0x11   : > { %p130_p11 = scmp.eq.s32.totalorder %s749_s25, 1  ;;  %p781_p12 = por %p44_p1, %p43_p10 }
  0x12   : > { %s777_s10 = scalar_select %p28_p8, %s686_s20, %s30_s8  }
  0x13   : > { %p785_p13 = por %p130_p11, %p37_p7  ;;  %p136_p0 = scmp.eq.s32.totalorder %s467_s6, 1 }
  0x14   : > { %p39_p2 = por %p38_p9, %p37_p7  ;;  %s202_s13 = sand.u32 1, %s686_s20  }
  0x15   : > { %p790_p4 = por %p136_p0, %p43_p10  ;;  %p514_p6 = scmp.lt.s32.totalorder %s690_s21, 2 }
  0x16   : > { %s471_s15 = sshll.u32 %s202_s13, 3  ;;  %s472_s16 = sshll.u32 %s690_s21, 3 }
  0x17   : > { %s210_s23 = scalar_lea.hbm %s879_s0, %s472_s16  ;;  %s206_s27 = scalar_lea.vmem [#allocation2], %s471_s15 }
  0x18   : > { %s212_s24 = sshll.u32 %s210_s23, 4  ;;  %s214_s28 = sshll.u32 %s206_s27, 4  ;;  %s213_s24 = int_to_ptr.hbm [resolvable:$true] %s212_s24  ;;  %s215_s28 = int_to_ptr.vmem [resolvable:$true] %s214_s28 }
  0x19   : > { %p799_p8 = pnand %p514_p6, %p39_p2  ;;  %s203_s30 = scalar_lea.sflag [#allocation3], %s202_s13 }
  0x1a   : > { %s590_s6 = sshra.s32 %s213_s24, 4  ;;  %s597_s15 = scalar_lea.hbm %s879_s0, 16  ;;  %s591_s6 = int_to_ptr.hbm [resolvable:$true] %s590_s6 }
  0x1b   : > { %s592_s8 = scalar_lea.hbm %s591_s6, 8  ;;  %p594_p9 = pneg %p799_p8 }
  0x1c   : > { %p593_p7 = scmp.ne.s32.totalorder %s591_s6, %s592_s8  ;;  %p598_p0 = scmp.lt.s32.totalorder %s591_s6, %s879_s0 }
  0x1d   : > { %p599_p2 = scmp.lt.s32.totalorder %s597_s15, %s592_s8 }
  0x1e   : > { %p595_p10 = pnand %p594_p9, %p593_p7 }
  0x1f   : > { %p600_p6 = por %p599_p2, %p598_p0 }
  0x20   : > { %p596_p11 = pneg %p595_p10 }
  0x22   : > { %p601_p5 = pnand %p600_p6, %p596_p11 }
  0x24   : > { %604 = shalt.err (!%p601_p5)
}
  0x25   : > { %508 = dma.hbm_to_vmem [thread:$0]  (!%p799_p8), %s213_s24, 128, %s215_s28, %s203_s30  }
  0x26   : > { %223 = sbr.rel (%p754_p3) target bundleno = 357 (0x165), region = 36  ;;  %s816_s13 = sand.u32 (!%p754_p3), 1, %s682_s19  }
  0x27   : > { %s474_s23 = sshll.u32 (!%p754_p3), %s816_s13, 3  ;;  %s226_s27 = scalar_lea.sflag (!%p754_p3), [#allocation3], %s816_s13 }
  0x28   : > { %s229_s6 = scalar_lea.vmem (!%p754_p3), [#allocation2], %s474_s23 }
  0x2b   : > { %665 = dma.done.wait (%p781_p12), %s226_s27, 128  }
  0x2c   : > { %667 = vsyncadd (%p781_p12), %s226_s27, 4294967168 }
  0x2d   : > { %669 = dma.done.wait (%p44_p1), [#allocation6], 256  }
  0x2e   : > { %671 = vsyncadd (%p44_p1), [#allocation6], 4294967040  ;;  %v492_v0 = vld [vmem:[#allocation5 + $0x8] sm:$0xff]  ;;  %v491_v1 = vld [vmem:[#allocation5] sm:$0xff]  ;;  %vm293_vm0 = vcmask 261120   ;;  %p266_p1 = scmp.lt.s32.totalorder %s749_s25, 1 }
  0x2f   : > { %303 = vmatpush.bf16.msra.mxu0 %v492_v0  ;;  %v271_v2 = vld [vmem:[%s229_s6] sm:$0xff]  ;;  %s488_s30 = sshll.u32 %s749_s25, 3  ;;  %vm336_vm1 = vcmask 7168   ;;  %s259_s6 = scalar_lea.vmem [#allocation7], %s474_s23 }
  0x30   : > { %v272_v3 = vpack.c.bf16 %v271_v2, %v271_v2  ;;  %v552_v4 = vld [vmem:[%s881_s2] ss:$0 sm:$0xff]  ;;  %s267_s29 = scalar_select %p266_p1, %s749_s25, 1 }
  0x31   : > { %v553_v7 = vld [vmem:[%s882_s3] ss:$0 sm:$0xff]  ;;  %s355_s15 = scalar_lea.hbm %s883_s4, %s488_s30  ;;  %s357_s26 = sshll.u32 %s259_s6, 4  ;;  %s358_s26 = int_to_ptr.vmem [resolvable:$true] %s357_s26 }
  0x32   : > { %s477_s8 = sshll.u32 %s267_s29, 3  ;;  %s359_s24 = sshll.u32 %s355_s15, 4  ;;  %s360_s24 = int_to_ptr.hbm [resolvable:$true] %s359_s24 }
  0x33   : > { %304 = vmatpush.bf16.msra.mxu0 %v491_v1  ;;  %s269_s27 = scalar_lea.vmem %s884_s5, %s477_s8  ;;  %s341_s25 = scalar_lea.sflag [#allocation4], %s816_s13 }
  0x34   : > { %s634_s11 = sshra.s32 %s360_s24, 4  ;;  %s640_s23 = scalar_lea.hbm %s883_s4, 16  ;;  %s635_s11 = int_to_ptr.hbm [resolvable:$true] %s634_s11 }
  0x35   : > { %s636_s28 = scalar_lea.hbm %s635_s11, 8  ;;  %p641_p8 = scmp.lt.s32.totalorder %s635_s11, %s883_s4 }
  0x36   : > { %486 = vmatmul.msk.bf16.vlgmr.msra.gmra.mxu0 %vm293_vm0, %v272_v3  ;;  %p637_p3 = scmp.ne.s32.totalorder %s635_s11, %s636_s28  ;;  %p642_p7 = scmp.lt.s32.totalorder %s640_s23, %s636_s28 }
  0x38   : > { %p638_p5 = pnand %p637_p3, %p785_p13  ;;  %p643_p9 = por %p642_p7, %p641_p8 }
  0x3a   : > { %p639_p12 = pneg %p638_p5 }
  0x3c   : > { %p644_p10 = pnand %p643_p9, %p639_p12 }
  0xb3   : > { %v306_v5 = vpop.f32.mrf.mxu0 }
  0xb4   : > { %v307_v6 = vadd.f32 %v552_v4, %v306_v5 }
  0xb6   : > { %554 = vtanh.f32 %v307_v6 }
  0xbb   : > { %v308_v8 = vpop.f32.mrf.mxu0 }
  0xbc   : > { %v555_v9 = vpop.eup %554 }
  0xbd   : > { %v315_v10 = vmul.f32 %v555_v9, %v553_v7 }
  0xbf   : > { %v316_v11 = vsel %vm293_vm0, %v315_v10, 0.0 }
  0xc0   : > { %317 = vadd.xlane.f32.xlu0 %v316_v11 }
 0x133   : > { %v318_v12 = vpop.xlane.xlu0 %317 }
 0x134   : > { %v319_v13 = vrot.slane %v318_v12, 4 }
 0x136   : > { %v320_v14 = vmax.f32 %v318_v12, %v319_v13 }
 0x138   : > { %v321_v15 = vrot.slane %v320_v14, 2 }
 0x13a   : > { %v322_v16 = vmax.f32 %v320_v14, %v321_v15 }
 0x13c   : > { %v323_v17 = vrot.slane %v322_v16, 1 }
 0x13e   : > { %v324_v18 = vmax.f32 %v322_v16, %v323_v17 }
 0x140   : > { %v325_v19 = vsub.f32 %v318_v12, %v324_v18 }
 0x142   : > { %v326_v20 = vmul.f32 1.442695, %v325_v19 }
 0x144   : > { %556 = vpow2.f32 %v326_v20 }
 0x14a   : > { %v557_v21 = vpop.eup %556 }
 0x14b   : > { %v328_v22 = vrot.slane %v557_v21, 4 }
 0x14d   : > { %v329_v23 = vadd.f32 %v557_v21, %v328_v22 }
 0x14f   : > { %v330_v24 = vrot.slane %v329_v23, 2 }
 0x151   : > { %v331_v25 = vadd.f32 %v330_v24, %v329_v23 }
 0x153   : > { %v332_v26 = vrot.slane %v331_v25, 1 }
 0x155   : > { %v333_v27 = vadd.f32 %v332_v26, %v331_v25 }
 0x157   : > { %558 = vrcp.f32 %v333_v27 }
 0x15d   : > { %v559_v28 = vpop.eup %558 }
 0x15e   : > { %v335_v29 = vmul.f32 %v559_v28, %v557_v21 }
 0x160   : > { %337 = vst.msk [vmem:[%s269_s27] sm:$0xff] %vm336_vm1, %v335_v29  ;;  %v338_v30 = vmul.f32 %v335_v29, %v271_v2 }
 0x162   : > { %339 = vst.msk [vmem:[%s259_s6] sm:$0xff] %vm293_vm0, %v338_v30 }
 0x163   : > { %647 = shalt.err (!%p644_p10)
}
 0x164   : > { %499 = dma.vmem_to_hbm [thread:$0]  (%p785_p13), %s358_s26, 128, %s360_s24, %s341_s25  }
 0x165 PF: > { %s374_s13 = sand.u32 1, %s678_s18   ;;  %p890_p11 = scmp.ge.s32.totalorder %s690_s21, 2 }
 0x166   : > { %s375_s16 = scalar_lea.sflag [#allocation4], %s374_s13 }
 0x167   : > { %p510_p0 = pnand %p890_p11, %p790_p4 }
 0x169   : > { %p511_p2 = pneg %p510_p0 }
 0x16b   : > { %673 = dma.done.wait (%p511_p2), %s375_s16, 128  }
 0x16c   : > { %675 = vsyncadd (%p511_p2), %s375_s16, 4294967168  ;;  %p20_p6 = scmp.ge.s32.totalorder %s765_s7, 4   ;;  %s891_s18 = smov %s682_s19 }
 0x16d   : > { %s892_s19 = smov %s686_s20  ;;  %s893_s20 = smov %s777_s10 }
 0x16e   : > { %s894_s21 = smov %s765_s7  ;;  %22 = sbr.rel (!%p20_p6) target bundleno = 6 (0x6), region = 97 }
 0x173   :  { %388 = vsyncpa [#allocation3], 1 }
 0x174   :  { %390 = vsyncpa [#allocation3 + $0x1], 1 }
 0x175   :  { %391 = vsyncpa [#allocation6], 1 }
 0x176   :  { %392 = vsyncpa [#allocation4], 1 }
 0x177   :  { %394 = vsyncpa [#allocation4 + $0x1], 1 }

</bundles_post_ra>
